<compile_context>
chip_gen: v7x
topology: tpu7x:2x2x1
jax: 0.10.0
libtpu: 0.0.40
codegen_flags: <defaults>
</compile_context>

<pallas_src>
import numpy as np
import jax
import jax.numpy as jnp
from jax.experimental import pallas as pl
from jax.experimental.pallas import tpu as pltpu


POOL_SIZES = (1, 2, 3, 6)
_R = sum(s * s for s in POOL_SIZES)          # 50 pooled positions over all branches
_R_PAD = 128                                 # lane-dense pooled-row count
_VMEM_LIMIT = 48 * 1024 * 1024               # safe on v7x (64 MiB); raise on v5e/v6e
_T_CAP = 1024                                # spatial tile cap; raise to 2048 on v5e/v6e


def _round_up(x, m):
    return ((x + m - 1) // m) * m


def _pick_spatial_tile(hw, cap=_T_CAP):
    """Pick a spatial tile: full HW if small, else a 128-multiple divisor (no pad)."""
    if hw <= cap:
        return hw
    for t in range(cap - cap % 128, 127, -128):
        if hw % t == 0:
            return t
    return cap  # fall back to padding


# ----------------------------------------------------------------------------
# Host-side constant matrices (exact PyTorch semantics)
# ----------------------------------------------------------------------------
def adaptive_pool_matrix(in_size, out_size):
    """AdaptiveAvgPool1d as a matrix: out = M @ in, M[a, start:end] = 1/len."""
    m = np.zeros((out_size, in_size), np.float32)
    for a in range(out_size):
        start = (a * in_size) // out_size
        end = -(-((a + 1) * in_size) // out_size)  # ceil
        m[a, start:end] = 1.0 / (end - start)
    return m


def bilinear_matrix(out_size, in_size):
    """Bilinear (align_corners=True) 1D upsample as a matrix (out_size, in_size)."""
    m = np.zeros((out_size, in_size), np.float32)
    if in_size == 1:
        m[:, 0] = 1.0
        return m
    for h in range(out_size):
        src = h * (in_size - 1) / (out_size - 1) if out_size > 1 else 0.0
        i0 = min(int(np.floor(src)), in_size - 1)
        i1 = min(i0 + 1, in_size - 1)
        f = src - i0
        m[h, i0] += 1.0 - f
        m[h, i1] += f
    return m


# ----------------------------------------------------------------------------
# Parameters (deterministic synthetic init; shapes follow the module __init__)
# ----------------------------------------------------------------------------
def _bn_params(key, c):
    k1, k2, k3, k4 = jax.random.split(key, 4)
    return dict(gamma=1.0 + 0.1 * jax.random.normal(k1, (c,), jnp.float32),
                beta=0.1 * jax.random.normal(k2, (c,), jnp.float32),
                mean=0.1 * jax.random.normal(k3, (c,), jnp.float32),
                var=0.5 + jax.random.uniform(k4, (c,), jnp.float32))


def bn_fold(bn, eps=1e-5):
    a = bn["gamma"] / jnp.sqrt(bn["var"] + eps)
    b = bn["beta"] - bn["mean"] * a
    return a, b


def init_params(key, in_channels):
    mid = in_channels // 4
    keys = jax.random.split(key, 8)
    p = {}
    for i in range(4):
        p[f"w_{i}"] = 0.05 * jax.random.normal(keys[i], (in_channels, mid),
                                               jnp.float32)
        p[f"bn_{i}"] = _bn_params(keys[4 + i], mid)
    return p


# ----------------------------------------------------------------------------
# Kernel 1: adaptive avg pool (all branches) + pass-through write
#           + epilogue 1x1 conv (BN folded) + bias + ReLU + mask
# ----------------------------------------------------------------------------
def _pool_conv_bn_relu_kernel(x_ref, pT_ref, w_ref, b_ref, m_ref,
                              conv_ref, pass_ref, acc_ref):
    # grid = (batch, spatial-k).  acc_ref: (C, R_PAD) f32 pooled accumulator.
    k = pl.program_id(1)

    @pl.when(k == 0)
    def _():
        acc_ref[...] = jnp.zeros_like(acc_ref)

    x_tile = x_ref[...]                          # (C, t_hw) f32
    pass_ref[...] = x_tile                       # exact pass-through channels

    # adaptive avg pool, all branches at once: (C, t_hw) @ (t_hw, R) -> (C, R)
    acc_ref[...] += jnp.dot(x_tile.astype(jnp.bfloat16), pT_ref[...],
                            preferred_element_type=jnp.float32)

    @pl.when(k == pl.num_programs(1) - 1)
    def _():
        # 1x1 conv (BN scale pre-folded into w) for all branches, in f32:
        #   (4*mid, C) @ (C, R) -> (4*mid, R)
        # TODO(synk): for very large C on v7x (64 MiB VMEM) hoist this epilogue
        #             (and the resident weight) into a separate tiny pallas_call.
        conv = jnp.dot(w_ref[...].astype(jnp.float32), acc_ref[...],
                       preferred_element_type=jnp.float32)
        conv = jnp.maximum(conv + b_ref[...], 0.0) * m_ref[...]  # bias+ReLU+mask
        conv_ref[...] = conv


# ----------------------------------------------------------------------------
# Kernel 2: bilinear upsample (all branches, one matmul) into channels [C:2C)
#           of the aliased output buffer (channels [0:C) written by kernel 1)
# ----------------------------------------------------------------------------
def _upsample_kernel(uT_ref, conv_ref, pass_hbm_ref, o_ref):
    del pass_hbm_ref  # aliased to the output; never read here
    # (4*mid, R_PAD) f32 @ (R_PAD, t_hw) f32 -> (C, t_hw) f32
    o_ref[...] = jnp.dot(conv_ref[...], uT_ref[...],
                         preferred_element_type=jnp.float32)


# ----------------------------------------------------------------------------
# _PyramidPooling forward
# ----------------------------------------------------------------------------
def pyramid_pooling_forward(x, params):
    N, C, H, W = x.shape
    assert C % 4 == 0 and C % 8 == 0
    mid = C // 4
    HW = H * W

    t_hw = _pick_spatial_tile(HW)
    HWp = _round_up(HW, t_hw)
    n_sp = HWp // t_hw

    x_flat = x.reshape(N, C, HW).astype(jnp.float32)
    if HWp != HW:
        x_flat = jnp.pad(x_flat, ((0, 0), (0, 0), (0, HWp - HW)))

    # --- constant pooling / upsample matrices for all branches ---------------
    p_rows, u_cols = [], []
    for s in POOL_SIZES:
        p_rows.append(np.kron(adaptive_pool_matrix(H, s),
                              adaptive_pool_matrix(W, s)))    # (s*s, HW)
        u_cols.append(np.kron(bilinear_matrix(H, s),
                              bilinear_matrix(W, s)))          # (HW, s*s)
    p_cat = np.concatenate(p_rows, axis=0)                     # (50, HW)
    u_cat = np.concatenate(u_cols, axis=1)                     # (HW, 50)

    pT = np.zeros((HWp, _R_PAD), np.float32)
    pT[:HW, :_R] = p_cat.T
    uT = np.zeros((_R_PAD, HWp), np.float32)
    uT[:_R, :HW] = u_cat.T

    # --- fold the four 1x1-conv / BN branches into one block weight ----------
    # BN scale pre-folded into the weight rows; only the bias remains.
    w_rows, b_rows = [], []
    for i in range(4):
        a, b = bn_fold(params[f"bn_{i}"])
        w_rows.append(params[f"w_{i}"].T * a[:, None])          # (mid, C)
        b_rows.append(b)
    w_bigT = jnp.concatenate(w_rows, axis=0).astype(jnp.bfloat16)   # (4*mid, C)
    bias = jnp.concatenate(b_rows).reshape(4 * mid, 1).astype(jnp.float32)

    # block-diagonal mask: channel group g only keeps pooled rows of branch g
    row_branch = np.full((_R_PAD,), -1, np.int32)
    off = 0
    for g, s in enumerate(POOL_SIZES):
        row_branch[off:off + s * s] = g
        off += s * s
    ch_branch = np.repeat(np.arange(4), mid)
    mask = (ch_branch[:, None] == row_branch[None, :]).astype(np.float32)

    # --- kernel 1: pool + pass-through write + conv/BN/ReLU/mask epilogue ----
    conv_masked, passthrough = pl.pallas_call(
        _pool_conv_bn_relu_kernel,
        out_shape=(jax.ShapeDtypeStruct((N, 4 * mid, _R_PAD), jnp.float32),
                   jax.ShapeDtypeStruct((N, 2 * C, HWp), jnp.float32)),
        grid_spec=pltpu.PrefetchScalarGridSpec(
            num_scalar_prefetch=0,
            grid=(N, n_sp),
            in_specs=[
                pl.BlockSpec((None, C, t_hw), lambda n, k: (n, 0, k)),
                pl.BlockSpec((t_hw, _R_PAD), lambda n, k: (k, 0)),
                pl.BlockSpec((4 * mid, C), lambda n, k: (0, 0)),
                pl.BlockSpec((4 * mid, 1), lambda n, k: (0, 0)),
                pl.BlockSpec((4 * mid, _R_PAD), lambda n, k: (0, 0)),
            ],
            out_specs=[
                pl.BlockSpec((None, 4 * mid, _R_PAD), lambda n, k: (n, 0, 0)),
                pl.BlockSpec((None, C, t_hw), lambda n, k: (n, 0, k)),
            ],
            scratch_shapes=[pltpu.VMEM((C, _R_PAD), jnp.float32)],
        ),
        compiler_params=pltpu.CompilerParams(
            dimension_semantics=("parallel", "arbitrary"),
            vmem_limit_bytes=_VMEM_LIMIT),
    )(x_flat,
      jnp.asarray(pT, jnp.bfloat16),
      w_bigT, bias, jnp.asarray(mask))

    # --- kernel 2: bilinear upsample into channels [C:2C) of the same buffer -
    out_p = pl.pallas_call(
        _upsample_kernel,
        out_shape=jax.ShapeDtypeStruct((N, 2 * C, HWp), jnp.float32),
        grid_spec=pltpu.PrefetchScalarGridSpec(
            num_scalar_prefetch=0,
            grid=(n_sp, N),                      # spatial outer, batch inner
            in_specs=[
                pl.BlockSpec((_R_PAD, t_hw), lambda j, n: (0, j)),
                pl.BlockSpec((None, 4 * mid, _R_PAD), lambda j, n: (n, 0, 0)),
                pl.BlockSpec(memory_space=pl.ANY),   # aliased, never read
            ],
            out_specs=pl.BlockSpec((None, C, t_hw), lambda j, n: (n, 1, j)),
        ),
        input_output_aliases={2: 0},
        compiler_params=pltpu.CompilerParams(
            dimension_semantics=("parallel", "parallel"),
            vmem_limit_bytes=_VMEM_LIMIT),
    )(jnp.asarray(uT), conv_masked, passthrough)

    out = out_p[:, :, :HW] if HWp != HW else out_p
    return out.reshape(N, 2 * C, H, W)


# ----------------------------------------------------------------------------
# Pure-JAX f32 reference (exact module semantics) for the correctness check
# ----------------------------------------------------------------------------
def pyramid_pooling_ref(x, params):
    N, C, H, W = x.shape
    xf = x.astype(jnp.float32)
    feats = [xf]
    for i, s in enumerate(POOL_SIZES):
        ph = jnp.asarray(adaptive_pool_matrix(H, s))
        pw = jnp.asarray(adaptive_pool_matrix(W, s))
        pooled = jnp.einsum("ah,bw,nchw->ncab", ph, pw, xf)       # adaptive pool
        conv = jnp.einsum("ncab,cm->nmab", pooled, params[f"w_{i}"])
        a, b = bn_fold(params[f"bn_{i}"])
        conv = jnp.maximum(conv * a[None, :, None, None]
                           + b[None, :, None, None], 0.0)
        uh = jnp.asarray(bilinear_matrix(H, s))
        uw = jnp.asarray(bilinear_matrix(W, s))
        up = jnp.einsum("ha,wb,nmab->nmhw", uh, uw, conv)          # bilinear up
        feats.append(up)
    return jnp.concatenate(feats, axis=1)


# ----------------------------------------------------------------------------
if __name__ == "__main__":
    # Small demo shapes keeping the module's ratios (mid = C/4, output = 2C).
    N, Cin, H, W = 2, 64, 16, 16

    key = jax.random.PRNGKey(0)
    kx, kp = jax.random.split(key)
    x = jax.random.normal(kx, (N, Cin, H, W), jnp.float32)
    params = init_params(kp, Cin)

    fwd = jax.jit(pyramid_pooling_forward)
    out = jax.block_until_ready(fwd(x, params))

    ref = pyramid_pooling_ref(x, params)
    assert out.shape == (N, 2 * Cin, H, W), out.shape
    err = float(jnp.max(jnp.abs(out - ref)))
    # bf16 streaming matmul operands (f32 accumulation & f32 epilogue).
    assert jnp.allclose(out, ref, rtol=2e-2, atol=2e-2), err

    print("KERNEL_OK")
</pallas_src>

<mosaic_0001>
module attributes {stable_mosaic.version = 11 : i64} {
  func.func @_pool_conv_bn_relu_kernel(%arg0: i32, %arg1: i32, %arg2: memref<1x64x256xf32, #tpu.memory_space<vmem>>, %arg3: memref<256x128xbf16, #tpu.memory_space<vmem>>, %arg4: memref<64x64xbf16, #tpu.memory_space<vmem>>, %arg5: memref<64x1xf32, #tpu.memory_space<vmem>>, %arg6: memref<64x128xf32, #tpu.memory_space<vmem>>, %arg7: memref<1x64x128xf32, #tpu.memory_space<vmem>>, %arg8: memref<1x64x256xf32, #tpu.memory_space<vmem>>, %arg9: memref<64x128xf32, #tpu.memory_space<vmem>>) attributes {dimension_semantics = [#tpu.dimension_semantics<parallel>, #tpu.dimension_semantics<arbitrary>], iteration_bounds = array<i64: 2, 1>, scalar_prefetch = 0 : i64, scratch_operands = 1 : i64, tpu.core_type = #tpu.core_type<tc>, window_params = [{transform_indices = @transform_0, window_bounds = array<i64: 1, 64, 256>}, {transform_indices = @transform_1, window_bounds = array<i64: 256, 128>}, {pipeline_mode = #tpu.pipeline_mode<synchronous>, transform_indices = @transform_2, window_bounds = array<i64: 64, 64>}, {pipeline_mode = #tpu.pipeline_mode<synchronous>, transform_indices = @transform_3, window_bounds = array<i64: 64, 1>}, {pipeline_mode = #tpu.pipeline_mode<synchronous>, transform_indices = @transform_4, window_bounds = array<i64: 64, 128>}, {transform_indices = @transform_5, window_bounds = array<i64: 1, 64, 128>}, {transform_indices = @transform_6, window_bounds = array<i64: 1, 64, 256>}]} {
    %c0_i32 = arith.constant 0 : i32
    %0 = arith.cmpi eq, %arg1, %c0_i32 : i32
    %1 = arith.extui %0 : i1 to i32
    %c0_i32_0 = arith.constant 0 : i32
    %2 = arith.cmpi ne, %1, %c0_i32_0 : i32
    scf.if %2 {
      %cst_14 = arith.constant 0.000000e+00 : f32
      %17 = vector.broadcast %cst_14 : f32 to vector<64x128xf32>
      %c0_15 = arith.constant 0 : index
      %c0_16 = arith.constant 0 : index
      %18 = vector.load %arg9[%c0_15, %c0_16] : memref<64x128xf32, #tpu.memory_space<vmem>>, vector<64x128xf32>
      tpu.vector_store %arg9[%c0_15, %c0_16], %17 {strides = array<i32>} : memref<64x128xf32, #tpu.memory_space<vmem>>, vector<64x128xf32>,
    } else {
    }
    %c0 = arith.constant 0 : index
    %c0_1 = arith.constant 0 : index
    %c0_2 = arith.constant 0 : index
    %3 = vector.load %arg2[%c0, %c0_1, %c0_2] : memref<1x64x256xf32, #tpu.memory_space<vmem>>, vector<1x64x256xf32>
    %4 = vector.shape_cast %3 : vector<1x64x256xf32> to vector<64x256xf32>
    %c0_3 = arith.constant 0 : index
    %c0_4 = arith.constant 0 : index
    %c0_5 = arith.constant 0 : index
    %5 = vector.load %arg8[%c0_3, %c0_4, %c0_5] : memref<1x64x256xf32, #tpu.memory_space<vmem>>, vector<1x64x256xf32>
    %6 = vector.shape_cast %5 : vector<1x64x256xf32> to vector<64x256xf32>
    %7 = vector.shape_cast %4 : vector<64x256xf32> to vector<1x64x256xf32>
    tpu.vector_store %arg8[%c0_3, %c0_4, %c0_5], %7 {strides = array<i32>} : memref<1x64x256xf32, #tpu.memory_space<vmem>>, vector<1x64x256xf32>,
    %c0_6 = arith.constant 0 : index
    %c0_7 = arith.constant 0 : index
    %8 = vector.load %arg9[%c0_6, %c0_7] : memref<64x128xf32, #tpu.memory_space<vmem>>, vector<64x128xf32>
    %9 = arith.truncf %4 : vector<64x256xf32> to vector<64x256xbf16>
    %c0_8 = arith.constant 0 : index
    %c0_9 = arith.constant 0 : index
    %10 = vector.load %arg3[%c0_8, %c0_9] : memref<256x128xbf16, #tpu.memory_space<vmem>>, vector<256x128xbf16>
    %cst = arith.constant dense<0.000000e+00> : vector<64x128xf32>
    %11 = tpu.matmul %9, %10, %cst {dimension_numbers = #tpu.dot_dimension_numbers<[1], [0], [0], [1], [0, 0, 1, 1], [], []>} : vector<64x256xbf16>, vector<256x128xbf16>, vector<64x128xf32> -> vector<64x128xf32>
    %12 = arith.addf %8, %11 : vector<64x128xf32>
    %c0_10 = arith.constant 0 : index
    %c0_11 = arith.constant 0 : index
    %13 = vector.load %arg9[%c0_10, %c0_11] : memref<64x128xf32, #tpu.memory_space<vmem>>, vector<64x128xf32>
    tpu.vector_store %arg9[%c0_10, %c0_11], %12 {strides = array<i32>} : memref<64x128xf32, #tpu.memory_space<vmem>>, vector<64x128xf32>,
    %c0_i32_12 = arith.constant 0 : i32
    %14 = arith.cmpi eq, %arg1, %c0_i32_12 : i32
    %15 = arith.extui %14 : i1 to i32
    %c0_i32_13 = arith.constant 0 : i32
    %16 = arith.cmpi ne, %15, %c0_i32_13 : i32
    scf.if %16 {
      %c0_14 = arith.constant 0 : index
      %c0_15 = arith.constant 0 : index
      %17 = vector.load %arg4[%c0_14, %c0_15] : memref<64x64xbf16, #tpu.memory_space<vmem>>, vector<64x64xbf16>
      %18 = arith.extf %17 : vector<64x64xbf16> to vector<64x64xf32>
      %c0_16 = arith.constant 0 : index
      %c0_17 = arith.constant 0 : index
      %19 = vector.load %arg9[%c0_16, %c0_17] : memref<64x128xf32, #tpu.memory_space<vmem>>, vector<64x128xf32>
      %cst_18 = arith.constant dense<0.000000e+00> : vector<64x128xf32>
      %20 = tpu.matmul %18, %19, %cst_18 {dimension_numbers = #tpu.dot_dimension_numbers<[1], [0], [0], [1], [0, 0, 1, 1], [], []>} : vector<64x64xf32>, vector<64x128xf32>, vector<64x128xf32> -> vector<64x128xf32>
      %c0_19 = arith.constant 0 : index
      %c0_20 = arith.constant 0 : index
      %21 = vector.load %arg5[%c0_19, %c0_20] : memref<64x1xf32, #tpu.memory_space<vmem>>, vector<64x1xf32>
      %22 = vector.broadcast %21 : vector<64x1xf32> to vector<64x128xf32>
      %23 = arith.addf %20, %22 : vector<64x128xf32>
      %cst_21 = arith.constant 0.000000e+00 : f32
      %24 = vector.broadcast %cst_21 : f32 to vector<64x128xf32>
      %25 = arith.maximumf %23, %24 : vector<64x128xf32>
      %c0_22 = arith.constant 0 : index
      %c0_23 = arith.constant 0 : index
      %26 = vector.load %arg6[%c0_22, %c0_23] : memref<64x128xf32, #tpu.memory_space<vmem>>, vector<64x128xf32>
      %27 = arith.mulf %25, %26 : vector<64x128xf32>
      %c0_24 = arith.constant 0 : index
      %c0_25 = arith.constant 0 : index
      %c0_26 = arith.constant 0 : index
      %28 = vector.load %arg7[%c0_24, %c0_25, %c0_26] : memref<1x64x128xf32, #tpu.memory_space<vmem>>, vector<1x64x128xf32>
      %29 = vector.shape_cast %28 : vector<1x64x128xf32> to vector<64x128xf32>
      %30 = vector.shape_cast %27 : vector<64x128xf32> to vector<1x64x128xf32>
      tpu.vector_store %arg7[%c0_24, %c0_25, %c0_26], %30 {strides = array<i32>} : memref<1x64x128xf32, #tpu.memory_space<vmem>>, vector<1x64x128xf32>,
    } else {
    }
    return
  }
  func.func @transform_0(%arg0: i32, %arg1: i32) -> (i32, i32, i32) {
    %c0_i32 = arith.constant 0 : i32
    %c0_i32_0 = arith.constant 0 : i32
    return %arg0, %c0_i32, %arg1 : i32, i32, i32
  }
  func.func @transform_1(%arg0: i32, %arg1: i32) -> (i32, i32) {
    %c0_i32 = arith.constant 0 : i32
    %c0_i32_0 = arith.constant 0 : i32
    return %arg1, %c0_i32 : i32, i32
  }
  func.func @transform_2(%arg0: i32, %arg1: i32) -> (i32, i32) {
    %c0_i32 = arith.constant 0 : i32
    %c0_i32_0 = arith.constant 0 : i32
    %c0_i32_1 = arith.constant 0 : i32
    return %c0_i32, %c0_i32_0 : i32, i32
  }
  func.func @transform_3(%arg0: i32, %arg1: i32) -> (i32, i32) {
    %c0_i32 = arith.constant 0 : i32
    %c0_i32_0 = arith.constant 0 : i32
    %c0_i32_1 = arith.constant 0 : i32
    return %c0_i32, %c0_i32_0 : i32, i32
  }
  func.func @transform_4(%arg0: i32, %arg1: i32) -> (i32, i32) {
    %c0_i32 = arith.constant 0 : i32
    %c0_i32_0 = arith.constant 0 : i32
    %c0_i32_1 = arith.constant 0 : i32
    return %c0_i32, %c0_i32_0 : i32, i32
  }
  func.func @transform_5(%arg0: i32, %arg1: i32) -> (i32, i32, i32) {
    %c0_i32 = arith.constant 0 : i32
    %c0_i32_0 = arith.constant 0 : i32
    %c0_i32_1 = arith.constant 0 : i32
    return %arg0, %c0_i32, %c0_i32_0 : i32, i32, i32
  }
  func.func @transform_6(%arg0: i32, %arg1: i32) -> (i32, i32, i32) {
    %c0_i32 = arith.constant 0 : i32
    %c0_i32_0 = arith.constant 0 : i32
    return %arg0, %c0_i32, %arg1 : i32, i32, i32
  }
}

module attributes {stable_mosaic.version = 11 : i64} {
  func.func @_upsample_kernel(%arg0: i32, %arg1: i32, %arg2: memref<128x256xf32, #tpu.memory_space<vmem>>, %arg3: memref<1x64x128xf32, #tpu.memory_space<vmem>>, %arg4: memref<2x128x256xf32, #tpu.memory_space<any>>, %arg5: memref<1x64x256xf32, #tpu.memory_space<vmem>>) attributes {dimension_semantics = [#tpu.dimension_semantics<parallel>, #tpu.dimension_semantics<parallel>], iteration_bounds = array<i64: 1, 2>, scalar_prefetch = 0 : i64, scratch_operands = 0 : i64, tpu.core_type = #tpu.core_type<tc>, window_params = [{transform_indices = @transform_0, window_bounds = array<i64: 128, 256>}, {transform_indices = @transform_1, window_bounds = array<i64: 1, 64, 128>}, {}, {transform_indices = @transform_3, window_bounds = array<i64: 1, 64, 256>}]} {
    %c0 = arith.constant 0 : index
    %c0_0 = arith.constant 0 : index
    %c0_1 = arith.constant 0 : index
    %0 = vector.load %arg3[%c0, %c0_0, %c0_1] : memref<1x64x128xf32, #tpu.memory_space<vmem>>, vector<1x64x128xf32>
    %1 = vector.shape_cast %0 : vector<1x64x128xf32> to vector<64x128xf32>
    %c0_2 = arith.constant 0 : index
    %c0_3 = arith.constant 0 : index
    %2 = vector.load %arg2[%c0_2, %c0_3] : memref<128x256xf32, #tpu.memory_space<vmem>>, vector<128x256xf32>
    %cst = arith.constant dense<0.000000e+00> : vector<64x256xf32>
    %3 = tpu.matmul %1, %2, %cst {dimension_numbers = #tpu.dot_dimension_numbers<[1], [0], [0], [1], [0, 0, 1, 1], [], []>} : vector<64x128xf32>, vector<128x256xf32>, vector<64x256xf32> -> vector<64x256xf32>
    %c0_4 = arith.constant 0 : index
    %c0_5 = arith.constant 0 : index
    %c0_6 = arith.constant 0 : index
    %4 = vector.load %arg5[%c0_4, %c0_5, %c0_6] : memref<1x64x256xf32, #tpu.memory_space<vmem>>, vector<1x64x256xf32>
    %5 = vector.shape_cast %4 : vector<1x64x256xf32> to vector<64x256xf32>
    %6 = vector.shape_cast %3 : vector<64x256xf32> to vector<1x64x256xf32>
    tpu.vector_store %arg5[%c0_4, %c0_5, %c0_6], %6 {strides = array<i32>} : memref<1x64x256xf32, #tpu.memory_space<vmem>>, vector<1x64x256xf32>,
    return
  }
  func.func @transform_0(%arg0: i32, %arg1: i32) -> (i32, i32) {
    %c0_i32 = arith.constant 0 : i32
    %c0_i32_0 = arith.constant 0 : i32
    return %c0_i32, %arg0 : i32, i32
  }
  func.func @transform_1(%arg0: i32, %arg1: i32) -> (i32, i32, i32) {
    %c0_i32 = arith.constant 0 : i32
    %c0_i32_0 = arith.constant 0 : i32
    %c0_i32_1 = arith.constant 0 : i32
    return %arg1, %c0_i32, %c0_i32_0 : i32, i32, i32
  }
  func.func @transform_3(%arg0: i32, %arg1: i32) -> (i32, i32, i32) {
    %c1_i32 = arith.constant 1 : i32
    %c0_i32 = arith.constant 0 : i32
    return %arg1, %c1_i32, %arg0 : i32, i32, i32
  }
}

</mosaic_0001>

<bundles_post_ra>
// kernel: pyramid_pooling_forward.3
= control target key start
LH: loop header
LB: loop body
LE: loop exit
PB: predicated region body
PF: predicated region fallthrough
CT: control target
= control target key end

     0   :  { %s611_s12 = smov 0   ;;  %s613_s13 = smov 0   ;;  %s774_s0 = inlined_call_operand.vmem [shape: f32[128,256], index: 0, kind: input, shape index: {}]   ;;  %s775_s1 = inlined_call_operand.vmem [shape: f32[2,64,128], index: 1, kind: input, shape index: {}]   ;;  %s776_s2 = inlined_call_operand.vmem [shape: f32[2,128,256], index: 2, kind: input, shape index: {}, may-alias: {2,3}]   ;;  %s777_s3 = inlined_call_operand.vmem [shape: f32[2,128,256], index: 3, kind: output, shape index: {}, may-alias: {2,3}]  }
   0x1   :  { %s615_s14 = smov 0  }
   0x2 LB: > { %s22_s2 = sadd.s32 1, %s584_s13  ;;  %p468_p0 = scmp.ge.s32.totalorder %s588_s14, 1  ;;  %s588_s14 = sphi %s615_s14, %s13_s14   ;;  %s584_s13 = sphi %s613_s13, %s779_s13   ;;  %s580_s12 = sphi %s611_s12, %s778_s12  }
   0x3   : > { %p23_p1 = scmp.ge.s32.totalorder %s22_s2, 2  ;;  %p138_p2 = scmp.lt.s32.totalorder %s588_s14, 3 }
   0x5   : > { %s781_s2 = smov (%p23_p1, %s22_s2), 0  ;;  %p139_p3 = pnand %p468_p0, %p138_p2 }
   0x6   : > { %v201_v0 = vld [vmem:[%s774_s0 + $0x8] sm:$0xff] (!%p139_p3)  ;;  %v203_v1 = vld [vmem:[%s774_s0 + $0x18] sm:$0xff] (!%p139_p3)  ;;  %v200_v2 = vld [vmem:[%s774_s0] sm:$0xff] (!%p139_p3)  ;;  %v590_v7 = vmov (!%p139_p3), 0.0   ;;  %p176_p4 = scmp.lt.s32.totalorder (!%p139_p3), %s580_s12, 1 }
   0x7   : > { %142 = sbr.rel (%p139_p3) target bundleno = 267 (0x10b), region = 28  ;;  %v493_v3 = vpack.c.bf16 (!%p139_p3), %v203_v1, %v201_v0  ;;  %v202_v4 = vld [vmem:[%s774_s0 + $0x10] sm:$0xff] (!%p139_p3)  ;;  %v205_v5 = vld [vmem:[%s774_s0 + $0x28] sm:$0xff] (!%p139_p3)  ;;  %v207_v6 = vld [vmem:[%s774_s0 + $0x38] sm:$0xff] (!%p139_p3)  ;;  %296 = vmatprep.mubr.f32.mxu0 (!%p139_p3), %v590_v7  ;;  %320 = vmatprep.mubr.f32.mxu1 (!%p139_p3), %v590_v7 }
   0x8   : > { %v495_v8 = vpack.c.bf16 (!%p139_p3), %v202_v4, %v200_v2  ;;  %v497_v9 = vpack.c.bf16 (!%p139_p3), %v207_v6, %v205_v5  ;;  %v204_v10 = vld [vmem:[%s774_s0 + $0x20] sm:$0xff] (!%p139_p3)  ;;  %v206_v11 = vld [vmem:[%s774_s0 + $0x30] sm:$0xff] (!%p139_p3)  ;;  %v209_v12 = vld [vmem:[%s774_s0 + $0x48] sm:$0xff] (!%p139_p3) }
   0x9   : > { %494 = vmatprep.subr.bf16.mxu0 (!%p139_p3), %v493_v3  ;;  %525 = vmatprep.subr.bf16.mxu1 (!%p139_p3), %v493_v3  ;;  %v211_v13 = vld [vmem:[%s774_s0 + $0x58] sm:$0xff] (!%p139_p3)  ;;  %v499_v14 = vpack.c.bf16 (!%p139_p3), %v206_v11, %v204_v10  ;;  %v208_v16 = vld [vmem:[%s774_s0 + $0x40] sm:$0xff] (!%p139_p3)  ;;  %v210_v17 = vld [vmem:[%s774_s0 + $0x50] sm:$0xff] (!%p139_p3) }
   0xa   : > { %496 = vmatpush1.bf16.msra.mxu0 (!%p139_p3), %v495_v8  ;;  %533 = vmatpush1.bf16.msra.mxu1 (!%p139_p3), %v495_v8  ;;  %v501_v15 = vpack.c.bf16 (!%p139_p3), %v211_v13, %v209_v12  ;;  %v213_v18 = vld [vmem:[%s774_s0 + $0x68] sm:$0xff] (!%p139_p3)  ;;  %v215_v19 = vld [vmem:[%s774_s0 + $0x78] sm:$0xff] (!%p139_p3)  ;;  %v503_v20 = vpack.c.bf16 (!%p139_p3), %v210_v17, %v208_v16  ;;  %v212_v22 = vld [vmem:[%s774_s0 + $0x60] sm:$0xff] (!%p139_p3) }
   0xb   : > { %498 = vmatprep.subr.bf16.mxu0 (!%p139_p3), %v497_v9  ;;  %526 = vmatprep.subr.bf16.mxu1 (!%p139_p3), %v497_v9  ;;  %v505_v21 = vpack.c.bf16 (!%p139_p3), %v215_v19, %v213_v18  ;;  %v214_v23 = vld [vmem:[%s774_s0 + $0x70] sm:$0xff] (!%p139_p3)  ;;  %v217_v24 = vld [vmem:[%s774_s0 + $0x88] sm:$0xff] (!%p139_p3)  ;;  %v219_v25 = vld [vmem:[%s774_s0 + $0x98] sm:$0xff] (!%p139_p3) }
   0xc   : > { %v507_v26 = vpack.c.bf16 (!%p139_p3), %v214_v23, %v212_v22  ;;  %v509_v27 = vpack.c.bf16 (!%p139_p3), %v219_v25, %v217_v24  ;;  %v216_v28 = vld [vmem:[%s774_s0 + $0x80] sm:$0xff] (!%p139_p3)  ;;  %v218_v29 = vld [vmem:[%s774_s0 + $0x90] sm:$0xff] (!%p139_p3)  ;;  %v221_v30 = vld [vmem:[%s774_s0 + $0xa8] sm:$0xff] (!%p139_p3) }
   0xd   : > { %v223_v31 = vld [vmem:[%s774_s0 + $0xb8] sm:$0xff] (!%p139_p3)  ;;  %v511_v32 = vpack.c.bf16 (!%p139_p3), %v218_v29, %v216_v28  ;;  %v220_v34 = vld [vmem:[%s774_s0 + $0xa0] sm:$0xff] (!%p139_p3)  ;;  %v222_v35 = vld [vmem:[%s774_s0 + $0xb0] sm:$0xff] (!%p139_p3) }
   0xe   : > { %500 = vmatpush1.bf16.msra.mxu0 %v499_v14  ;;  %534 = vmatpush1.bf16.msra.mxu1 %v499_v14  ;;  %v513_v33 = vpack.c.bf16 %v223_v31, %v221_v30  ;;  %v225_v36 = vld [vmem:[%s774_s0 + $0xc8] sm:$0xff]  ;;  %v227_v37 = vld [vmem:[%s774_s0 + $0xd8] sm:$0xff]  ;;  %v515_v38 = vpack.c.bf16 %v222_v35, %v220_v34  ;;  %v224_v40 = vld [vmem:[%s774_s0 + $0xc0] sm:$0xff]  ;;  %s783_s12 = smov (!%p176_p4, %s580_s12), 1 }
   0xf   : > { %502 = vmatprep.subr.bf16.mxu0 %v501_v15  ;;  %527 = vmatprep.subr.bf16.mxu1 %v501_v15  ;;  %v517_v39 = vpack.c.bf16 %v227_v37, %v225_v36  ;;  %v226_v41 = vld [vmem:[%s774_s0 + $0xd0] sm:$0xff]  ;;  %v229_v42 = vld [vmem:[%s774_s0 + $0xe8] sm:$0xff]  ;;  %v231_v43 = vld [vmem:[%s774_s0 + $0xf8] sm:$0xff]  ;;  %s491_s4 = sshll.u32 %s783_s12, 6  ;;  %s492_s8 = sshll.u32 %s783_s12, 8 }
  0x10   : > { %v519_v44 = vpack.c.bf16 %v226_v41, %v224_v40  ;;  %v521_v45 = vpack.c.bf16 %v231_v43, %v229_v42  ;;  %v228_v46 = vld [vmem:[%s774_s0 + $0xe0] sm:$0xff]  ;;  %v230_v47 = vld [vmem:[%s774_s0 + $0xf0] sm:$0xff]  ;;  %s180_s7 = scalar_lea.vmem %s775_s1, %s491_s4  ;;  %s747_s11 = scalar_lea.vmem %s777_s3, %s492_s8 }
  0x11   : > { %v523_v48 = vpack.c.bf16 %v230_v47, %v228_v46  ;;  %v192_v49 = vld [vmem:[%s180_s7] sm:$0xff]  ;;  %v193_v51 = vld [vmem:[%s180_s7 + $0x8] sm:$0xff]  ;;  %v194_v53 = vld [vmem:[%s180_s7 + $0x10] sm:$0xff] }
  0x12   : > { %504 = vmatpush1.bf16.msra.mxu0 %v503_v20  ;;  %535 = vmatpush1.bf16.msra.mxu1 %v503_v20  ;;  %v196_v50 = vld [vmem:[%s180_s7 + $0x20] sm:$0xff]  ;;  %v197_v52 = vld [vmem:[%s180_s7 + $0x28] sm:$0xff]  ;;  %v198_v54 = vld [vmem:[%s180_s7 + $0x30] sm:$0xff] }
  0x13   : > { %506 = vmatprep.subr.bf16.mxu0 %v505_v21  ;;  %528 = vmatprep.subr.bf16.mxu1 %v505_v21  ;;  %v195_v55 = vld [vmem:[%s180_s7 + $0x18] sm:$0xff] }
  0x14   : > { %v199_v56 = vld [vmem:[%s180_s7 + $0x38] sm:$0xff] }
  0x16   : > { %508 = vmatpush1.bf16.msra.mxu0 %v507_v26  ;;  %536 = vmatpush1.bf16.msra.mxu1 %v507_v26 }
  0x17   : > { %510 = vmatprep.subr.bf16.mxu0 %v509_v27  ;;  %529 = vmatprep.subr.bf16.mxu1 %v509_v27 }
  0x1a   : > { %512 = vmatpush1.bf16.msra.mxu0 %v511_v32  ;;  %537 = vmatpush1.bf16.msra.mxu1 %v511_v32 }
  0x1b   : > { %514 = vmatprep.subr.bf16.mxu0 %v513_v33  ;;  %530 = vmatprep.subr.bf16.mxu1 %v513_v33 }
  0x1e   : > { %516 = vmatpush1.bf16.msra.mxu0 %v515_v38  ;;  %538 = vmatpush1.bf16.msra.mxu1 %v515_v38 }
  0x1f   : > { %518 = vmatprep.subr.bf16.mxu0 %v517_v39  ;;  %531 = vmatprep.subr.bf16.mxu1 %v517_v39 }
  0x22   : > { %520 = vmatpush1.bf16.msra.mxu0 %v519_v44  ;;  %539 = vmatpush1.bf16.msra.mxu1 %v519_v44 }
  0x23   : > { %522 = vmatprep.subr.bf16.mxu0 %v521_v45  ;;  %532 = vmatprep.subr.bf16.mxu1 %v521_v45 }
  0x26   : > { %524 = vmatpush1.bf16.msra.mxu0 %v523_v48  ;;  %540 = vmatpush1.bf16.msra.mxu1 %v523_v48 }
  0x29   : > { %297 = vmatmul.mubr.f32.vlgmr.msra.gmra.mrb[0].mxu0 %v192_v49  ;;  %321 = vmatmul.mubr.f32.vlgmr.msra.gmra.mrb[0].mxu1 %v196_v50 }
  0x2a   : > { %302 = vmatprep.mubr.f32.mxu0 %v590_v7  ;;  %326 = vmatprep.mubr.f32.mxu1 %v590_v7 }
  0x2d   : > { %303 = vmatmul.mubr.f32.gmra.mrb[2].mxu0 %v193_v51  ;;  %327 = vmatmul.mubr.f32.gmra.mrb[2].mxu1 %v197_v52 }
  0x2e   : > { %308 = vmatprep.mubr.f32.mxu0 %v590_v7  ;;  %332 = vmatprep.mubr.f32.mxu1 %v590_v7 }
  0x31   : > { %309 = vmatmul.mubr.f32.gmra.mrb[4].mxu0 %v194_v53  ;;  %333 = vmatmul.mubr.f32.gmra.mrb[4].mxu1 %v198_v54 }
  0x32   : > { %314 = vmatprep.mubr.f32.mxu0 %v590_v7  ;;  %338 = vmatprep.mubr.f32.mxu1 %v590_v7 }
  0x35   : > { %315 = vmatmul.mubr.f32.gmra.mrb[6].mxu0 %v195_v55  ;;  %339 = vmatmul.mubr.f32.gmra.mrb[6].mxu1 %v199_v56 }
  0xfc   : > { %v298_v57 = vpop.f32.mrb[0].mxu0  ;;  %v322_v58 = vpop.f32.mrb[0].mxu1 }
  0xfd   : > { %473 = vst [vmem:[%s747_s11 + $0x80] sm:$0xff] %v298_v57  ;;  %481 = vst [vmem:[%s747_s11 + $0xc0] sm:$0xff] %v322_v58  ;;  %v300_v59 = vpop.f32.mrb[1].mxu0  ;;  %v324_v60 = vpop.f32.mrb[1].mxu1 }
  0xfe   : > { %474 = vst [vmem:[%s747_s11 + $0x88] sm:$0xff] %v300_v59  ;;  %482 = vst [vmem:[%s747_s11 + $0xc8] sm:$0xff] %v324_v60 }
 0x100   : > { %v304_v61 = vpop.f32.mrb[2].mxu0  ;;  %v328_v62 = vpop.f32.mrb[2].mxu1 }
 0x101   : > { %475 = vst [vmem:[%s747_s11 + $0x90] sm:$0xff] %v304_v61  ;;  %483 = vst [vmem:[%s747_s11 + $0xd0] sm:$0xff] %v328_v62  ;;  %v306_v63 = vpop.f32.mrb[3].mxu0  ;;  %v330_v0 = vpop.f32.mrb[3].mxu1 }
 0x102   : > { %476 = vst [vmem:[%s747_s11 + $0x98] sm:$0xff] %v306_v63  ;;  %484 = vst [vmem:[%s747_s11 + $0xd8] sm:$0xff] %v330_v0 }
 0x104   : > { %v310_v1 = vpop.f32.mrb[4].mxu0  ;;  %v334_v2 = vpop.f32.mrb[4].mxu1 }
 0x105   : > { %477 = vst [vmem:[%s747_s11 + $0xa0] sm:$0xff] %v310_v1  ;;  %485 = vst [vmem:[%s747_s11 + $0xe0] sm:$0xff] %v334_v2  ;;  %v312_v3 = vpop.f32.mrb[5].mxu0  ;;  %v336_v4 = vpop.f32.mrb[5].mxu1 }
 0x106   : > { %478 = vst [vmem:[%s747_s11 + $0xa8] sm:$0xff] %v312_v3  ;;  %486 = vst [vmem:[%s747_s11 + $0xe8] sm:$0xff] %v336_v4 }
 0x108   : > { %v316_v5 = vpop.f32.mrb[6].mxu0  ;;  %v340_v6 = vpop.f32.mrb[6].mxu1 }
 0x109   : > { %479 = vst [vmem:[%s747_s11 + $0xb0] sm:$0xff] %v316_v5  ;;  %487 = vst [vmem:[%s747_s11 + $0xf0] sm:$0xff] %v340_v6  ;;  %v318_v7 = vpop.f32.mrb[7].mxu0  ;;  %v342_v8 = vpop.f32.mrb[7].mxu1 }
 0x10a   : > { %480 = vst [vmem:[%s747_s11 + $0xb8] sm:$0xff] %v318_v7  ;;  %488 = vst [vmem:[%s747_s11 + $0xf8] sm:$0xff] %v342_v8 }
 0x10b PF: > { %s13_s14 = sadd.s32 1, %s588_s14   ;;  %s778_s12 = smov %s584_s13 }
 0x10c   : > { %p10_p5 = scmp.ge.s32.totalorder %s13_s14, 4   ;;  %s779_s13 = smov %s781_s2 }
 0x10e   :  { %12 = sbr.rel (!%p10_p5) target bundleno = 2 (0x2), region = 61 }

// kernel: pyramid_pooling_forward.2
= control target key start
LH: loop header
LB: loop body
LE: loop exit
PB: predicated region body
PF: predicated region fallthrough
CT: control target
= control target key end

     0   :  { %s1231_s21 = smov 0   ;;  %s1233_s22 = smov 0   ;;  %s1438_s0 = inlined_call_operand.vmem [shape: f32[2,64,256], index: 0, kind: input, shape index: {}]   ;;  %s1439_s1 = inlined_call_operand.vmem [shape: bf16[256,128], index: 1, kind: input, shape index: {}]   ;;  %s1440_s2 = inlined_call_operand.vmem [shape: bf16[64,64], index: 2, kind: input, shape index: {}]   ;;  %s1441_s3 = inlined_call_operand.vmem [shape: f32[64,1], index: 3, kind: input, shape index: {}]   ;;  %s1442_s4 = inlined_call_operand.vmem [shape: f32[64,128], index: 4, kind: input, shape index: {}]   ;;  %s1443_s5 = inlined_call_operand.vmem [shape: f32[2,64,128], index: 5, kind: output, shape index: {0}]   ;;  %s1444_s6 = inlined_call_operand.vmem [shape: f32[2,128,256], index: 6, kind: output, shape index: {1}]  }
   0x1   :  { %s1235_s23 = smov 0  }
   0x2 LB: > { %s29_s24 = sadd.s32 1, %s1189_s22  ;;  %p973_p0 = scmp.ge.s32.totalorder %s1193_s23, 1  ;;  %s1193_s23 = sphi %s1235_s23, %s17_s23   ;;  %s1189_s22 = sphi %s1233_s22, %s1446_s22   ;;  %s1185_s21 = sphi %s1231_s21, %s1445_s21  }
   0x3   : > { %p31_p1 = scmp.ge.s32.totalorder %s29_s24, 2  ;;  %p247_p2 = scmp.lt.s32.totalorder %s1193_s23, 3 }
   0x5   : > { %s1448_s24 = smov (%p31_p1, %s29_s24), 0  ;;  %p248_p3 = pnand %p973_p0, %p247_p2 }
   0x6   : > { %v1155_v0 = vld [vmem:[%s1439_s1 + $0x40] sm:$0xff] (!%p248_p3)   ;;  %v1157_v2 = vld [vmem:[%s1439_s1 + $0x48] sm:$0xff] (!%p248_p3)   ;;  %p296_p4 = scmp.lt.s32.totalorder (!%p248_p3), %s1185_s21, 1  ;;  %v1159_v4 = vld [vmem:[%s1439_s1 + $0x50] sm:$0xff] (!%p248_p3)   ;;  %vm671_vm0 = vcmask (!%p248_p3), 523264   ;;  %v1195_v44 = vmov (!%p248_p3), 0  }
   0x7   : > { %251 = sbr.rel (%p248_p3) target bundleno = 518 (0x206), region = 40  ;;  %v1156_v1 = vld [vmem:[%s1439_s1] sm:$0xff] (!%p248_p3)   ;;  %1028 = vmatprep.subr.bf16.mxu0 (!%p248_p3), %v1155_v0  ;;  %v1158_v3 = vld [vmem:[%s1439_s1 + $0x8] sm:$0xff] (!%p248_p3)   ;;  %v1160_v5 = vld [vmem:[%s1439_s1 + $0x10] sm:$0xff] (!%p248_p3)   ;;  %1154 = vset.pattern.permute.xlu1 (!%p248_p3), %v1195_v44 }
   0x8   : > { %1029 = vmatpush3.bf16.msra.mxu0 (!%p248_p3), %v1156_v1  ;;  %v1161_v6 = vld [vmem:[%s1439_s1 + $0x58] sm:$0xff] (!%p248_p3)   ;;  %v1163_v8 = vld [vmem:[%s1439_s1 + $0x60] sm:$0xff] (!%p248_p3)   ;;  %v1165_v10 = vld [vmem:[%s1439_s1 + $0x68] sm:$0xff] (!%p248_p3)   ;;  %1153 = vset.pattern.permute.xlu0 (!%p248_p3), %v1195_v44 }
   0x9   : > { %1030 = vmatprep.subr.bf16.mxu0 (!%p248_p3), %v1157_v2  ;;  %v1162_v7 = vld [vmem:[%s1439_s1 + $0x18] sm:$0xff] (!%p248_p3)   ;;  %v1164_v9 = vld [vmem:[%s1439_s1 + $0x20] sm:$0xff] (!%p248_p3)   ;;  %v1166_v14 = vld [vmem:[%s1439_s1 + $0x28] sm:$0xff] (!%p248_p3)  }
   0xa   : > { %v1167_v19 = vld [vmem:[%s1439_s1 + $0x70] sm:$0xff] (!%p248_p3)   ;;  %v1169_v31 = vld [vmem:[%s1439_s1 + $0x78] sm:$0xff] (!%p248_p3)   ;;  %v1346_v40 = vld [vmem:[%s1440_s2] sm:$0xff] (!%p248_p3)  }
   0xb   : > { %v1168_v30 = vld [vmem:[%s1439_s1 + $0x30] sm:$0xff] (!%p248_p3)   ;;  %v1170_v32 = vld [vmem:[%s1439_s1 + $0x38] sm:$0xff] (!%p248_p3)   ;;  %v1011_v41 = vunpack.c.l.bf16 (!%p248_p3), %v1346_v40  ;;  %v623_v43 = vld [vmem:[%s1441_s3] sm:$0xff] (!%p248_p3) }
   0xc   : > { %1031 = vmatpush3.bf16.msra.mxu0 (!%p248_p3), %v1158_v3  ;;  %v625_v42 = vld [vmem:[%s1441_s3 + $0x10] sm:$0xff] (!%p248_p3)  ;;  %633 = vperm.xlu0 (!%p248_p3), %1153, %v623_v43   ;;  %v626_v45 = vld [vmem:[%s1441_s3 + $0x18] sm:$0xff] (!%p248_p3)  ;;  %v624_v46 = vld [vmem:[%s1441_s3 + $0x8] sm:$0xff] (!%p248_p3) }
   0xd   : > { %1032 = vmatprep.subr.bf16.mxu0 (!%p248_p3), %v1159_v4  ;;  %1100 = vmatprep.mubr.msk.f32.mxu1 (!%p248_p3), %vm671_vm0, %v1011_v41  ;;  %v628_v47 = vld [vmem:[%s1441_s3 + $0x28] sm:$0xff] (!%p248_p3)  ;;  %v627_v48 = vld [vmem:[%s1441_s3 + $0x20] sm:$0xff] (!%p248_p3)  ;;  %v630_v49 = vld [vmem:[%s1441_s3 + $0x38] sm:$0xff] (!%p248_p3) }
   0xe   : > { %s1450_s21 = smov (!%p296_p4, %s1185_s21), 1  ;;  %643 = vperm.xlu1 %1154, %v625_v42   ;;  %v629_v50 = vld [vmem:[%s1441_s3 + $0x30] sm:$0xff]  ;;  %v812_v43 = vld [vmem:[%s1442_s4 + $0x18] sm:$0xff] }
   0xf   : > { %s1006_s15 = sshll.u32 %s1450_s21, 7  ;;  %s1008_s18 = sshll.u32 %s1450_s21, 8 }
  0x10   : > { %1033 = vmatpush3.bf16.msra.mxu0 %v1160_v5  ;;  %s1283_s27 = scalar_lea.vmem %s1438_s0, %s1006_s15  ;;  %s1291_s8 = scalar_lea.vmem %s1444_s6, %s1008_s18  ;;  %638 = vperm.xlu0 %1153, %v624_v46  }
  0x11   : > { %1034 = vmatprep.subr.bf16.mxu0 %v1161_v6  ;;  %v340_v11 = vld [vmem:[%s1283_s27 + $0x8] sm:$0xff]  ;;  %v342_v12 = vld [vmem:[%s1283_s27 + $0x18] sm:$0xff]  ;;  %v339_v13 = vld [vmem:[%s1283_s27] sm:$0xff]  ;;  %s1007_s29 = sshll.u32 %s1450_s21, 6 }
  0x12   : > { %356 = vst [vmem:[%s1291_s8 + $0x8] sm:$0xff] %v340_v11  ;;  %358 = vst [vmem:[%s1291_s8 + $0x18] sm:$0xff] %v342_v12  ;;  %v380_v15 = vpack.c.bf16 %v342_v12, %v340_v11  ;;  %v341_v16 = vld [vmem:[%s1283_s27 + $0x10] sm:$0xff]  ;;  %v344_v17 = vld [vmem:[%s1283_s27 + $0x28] sm:$0xff]  ;;  %648 = vperm.xlu1 %1154, %v626_v45   ;;  %s1401_s12 = scalar_lea.vmem %s1443_s5, %s1007_s29 }
  0x13   : > { %355 = vst [vmem:[%s1291_s8] sm:$0xff] %v339_v13  ;;  %v346_v18 = vld [vmem:[%s1283_s27 + $0x38] sm:$0xff]  ;;  %357 = vst [vmem:[%s1291_s8 + $0x10] sm:$0xff] %v341_v16  ;;  %v343_v20 = vld [vmem:[%s1283_s27 + $0x20] sm:$0xff]  ;;  %v379_v33 = vpack.c.bf16 %v341_v16, %v339_v13  ;;  %v1012_v16 = vunpack.c.h.bf16 %v1346_v40 }
  0x14   : > { %1035 = vmatpush3.bf16.msra.mxu0 %v1162_v7  ;;  %360 = vst [vmem:[%s1291_s8 + $0x28] sm:$0xff] %v344_v17  ;;  %362 = vst [vmem:[%s1291_s8 + $0x38] sm:$0xff] %v346_v18  ;;  %v345_v21 = vld [vmem:[%s1283_s27 + $0x30] sm:$0xff]  ;;  %v348_v22 = vld [vmem:[%s1283_s27 + $0x48] sm:$0xff]  ;;  %547 = vmatprep.mubr.bf16.mxu0 %v380_v15  ;;  %v382_v34 = vpack.c.bf16 %v346_v18, %v344_v17 }
  0x15   : > { %1036 = vmatprep.subr.bf16.mxu0 %v1163_v8  ;;  %359 = vst [vmem:[%s1291_s8 + $0x20] sm:$0xff] %v343_v20  ;;  %361 = vst [vmem:[%s1291_s8 + $0x30] sm:$0xff] %v345_v21  ;;  %v350_v23 = vld [vmem:[%s1283_s27 + $0x58] sm:$0xff]  ;;  %v347_v24 = vld [vmem:[%s1283_s27 + $0x40] sm:$0xff]  ;;  %v381_v35 = vpack.c.bf16 %v345_v21, %v343_v20  ;;  %653 = vperm.xlu0 %1153, %v627_v48  }
  0x16   : > { %364 = vst [vmem:[%s1291_s8 + $0x48] sm:$0xff] %v348_v22  ;;  %v349_v25 = vld [vmem:[%s1283_s27 + $0x50] sm:$0xff]  ;;  %366 = vst [vmem:[%s1291_s8 + $0x58] sm:$0xff] %v350_v23  ;;  %v352_v26 = vld [vmem:[%s1283_s27 + $0x68] sm:$0xff]  ;;  %v384_v36 = vpack.c.bf16 %v350_v23, %v348_v22  ;;  %658 = vperm.xlu1 %1154, %v628_v47  }
  0x17   : > { %363 = vst [vmem:[%s1291_s8 + $0x40] sm:$0xff] %v347_v24  ;;  %365 = vst [vmem:[%s1291_s8 + $0x50] sm:$0xff] %v349_v25  ;;  %v354_v27 = vld [vmem:[%s1283_s27 + $0x78] sm:$0xff]  ;;  %v351_v28 = vld [vmem:[%s1283_s27 + $0x60] sm:$0xff]  ;;  %v383_v37 = vpack.c.bf16 %v349_v25, %v347_v24 }
  0x18   : > { %1037 = vmatpush3.bf16.msra.mxu0 %v1164_v9  ;;  %368 = vst [vmem:[%s1291_s8 + $0x68] sm:$0xff] %v352_v26  ;;  %370 = vst [vmem:[%s1291_s8 + $0x78] sm:$0xff] %v354_v27  ;;  %v353_v29 = vld [vmem:[%s1283_s27 + $0x70] sm:$0xff]  ;;  %v386_v38 = vpack.c.bf16 %v354_v27, %v352_v26  ;;  %v1025_v15 = vld [vmem:[%s1440_s2 + $0x8] sm:$0xff]  }
  0x19   : > { %1038 = vmatprep.subr.bf16.mxu0 %v1165_v10  ;;  %367 = vst [vmem:[%s1291_s8 + $0x60] sm:$0xff] %v351_v28  ;;  %369 = vst [vmem:[%s1291_s8 + $0x70] sm:$0xff] %v353_v29  ;;  %v385_v39 = vpack.c.bf16 %v353_v29, %v351_v28  ;;  %663 = vperm.xlu0 %1153, %v629_v50   ;;  %v1015_v17 = vunpack.c.l.bf16 %v1025_v15  ;;  %v1026_v18 = vld [vmem:[%s1440_s2 + $0x10] sm:$0xff]   ;;  %v1027_v21 = vld [vmem:[%s1440_s2 + $0x18] sm:$0xff]  }
  0x1a   : > { %668 = vperm.xlu1 %1154, %v630_v49   ;;  %v1019_v20 = vunpack.c.l.bf16 %v1026_v18  ;;  %v1020_v22 = vunpack.c.h.bf16 %v1026_v18  ;;  %v1023_v23 = vunpack.c.l.bf16 %v1027_v21  ;;  %v1024_v24 = vunpack.c.h.bf16 %v1027_v21  ;;  %v811_v47 = vld [vmem:[%s1442_s4 + $0x10] sm:$0xff] }
  0x1c   : > { %1039 = vmatpush3.bf16.msra.mxu0 %v1166_v14 }
  0x1d   : > { %1040 = vmatprep.subr.bf16.mxu0 %v1167_v19  ;;  %v1016_v19 = vunpack.c.h.bf16 %v1025_v15 }
  0x20   : > { %1041 = vmatpush3.bf16.msra.mxu0 %v1168_v30 }
  0x21   : > { %1042 = vmatprep.subr.bf16.mxu0 %v1169_v31 }
  0x24   : > { %1043 = vmatpush3.bf16.msra.mxu0 %v1170_v32  ;;  %v810_v32 = vld [vmem:[%s1442_s4 + $0x8] sm:$0xff] }
  0x27   : > { %548 = vmatmul.mubr.bf16.vlgmr.msra.gmra.mrb[0].mxu0 %v379_v33 }
  0x28   : > { %555 = vmatprep.mubr.bf16.mxu0 %v382_v34 }
  0x2f   : > { %556 = vmatmul.mubr.bf16.gmra.mrb[4].mxu0 %v381_v35  ;;  %v809_v35 = vld [vmem:[%s1442_s4] sm:$0xff] }
  0x30   : > { %563 = vmatprep.mubr.bf16.mxu0 %v384_v36 }
  0x37   : > { %564 = vmatmul.mubr.bf16.gmra.mrb[8].mxu0 %v383_v37 }
  0x38   : > { %571 = vmatprep.mubr.bf16.mxu0 %v386_v38 }
  0x3f   : > { %572 = vmatmul.mubr.bf16.gmra.mrb[12].mxu0 %v385_v39 }
  0x8b   : > { %v634_v26 = vpop.permute.xlu0 %633 }
  0x8d   : > { %v644_v25 = vpop.permute.xlu1 %643 }
  0x8f   : > { %v639_v28 = vpop.permute.xlu0 %638 }
  0x91   : > { %v649_v27 = vpop.permute.xlu1 %648 }
  0x94   : > { %v654_v45 = vpop.permute.xlu0 %653 }
  0x95   : > { %v659_v41 = vpop.permute.xlu1 %658 }
  0xfa   : > { %v1044_v51 = vpop.f32.mrb[0].mxu0 }
  0xfb   : > { %v1045_v52 = vpop.f32.mrb[1].mxu0 }
  0xfc   : > { %v1046_v53 = vadd.f32 %v1045_v52, %v1044_v51  ;;  %v1047_v54 = vpop.f32.mrb[2].mxu0 }
  0xfd   : > { %v1048_v55 = vpop.f32.mrb[3].mxu0 }
  0xfe   : > { %v1049_v56 = vadd.f32 %v1048_v55, %v1047_v54  ;;  %v814_v54 = vld [vmem:[%s1442_s4 + $0x28] sm:$0xff] }
 0x100   : > { %v1112_v57 = vpack.c.bf16 %v1049_v56, %v1046_v53 }
 0x102   : > { %v1050_v58 = vpop.f32.mrb[4].mxu0  ;;  %1113 = vmatprep.subr.bf16.mxu1 %v1112_v57 }
 0x103   : > { %v1051_v59 = vpop.f32.mrb[5].mxu0  ;;  %1115 = vmatpush3.bf16.msra.mxu1 %v1112_v57  ;;  %v813_v57 = vld [vmem:[%s1442_s4 + $0x20] sm:$0xff] }
 0x104   : > { %v1052_v60 = vadd.f32 %v1051_v59, %v1050_v58  ;;  %v1053_v61 = vpop.f32.mrb[6].mxu0  ;;  %v669_v58 = vpop.permute.xlu1 %668 }
 0x105   : > { %v1054_v62 = vpop.f32.mrb[7].mxu0 }
 0x106   : > { %v1055_v63 = vadd.f32 %v1054_v62, %v1053_v61  ;;  %v664_v61 = vpop.permute.xlu0 %663 }
 0x108   : > { %v1116_v0 = vpack.c.bf16 %v1055_v63, %v1052_v60 }
 0x10a   : > { %v1056_v1 = vpop.f32.mrb[8].mxu0  ;;  %1117 = vmatprep.subr.bf16.mxu1 %v1116_v0 }
 0x10b   : > { %v1057_v2 = vpop.f32.mrb[9].mxu0  ;;  %1119 = vmatpush3.bf16.msra.mxu1 %v1116_v0 }
 0x10c   : > { %v1058_v3 = vadd.f32 %v1057_v2, %v1056_v1  ;;  %v1059_v4 = vpop.f32.mrb[10].mxu0  ;;  %v816_v2 = vld [vmem:[%s1442_s4 + $0x38] sm:$0xff] }
 0x10d   : > { %v1060_v5 = vpop.f32.mrb[11].mxu0 }
 0x10e   : > { %v1061_v6 = vadd.f32 %v1060_v5, %v1059_v4  ;;  %v815_v5 = vld [vmem:[%s1442_s4 + $0x30] sm:$0xff] }
 0x110   : > { %v1120_v7 = vpack.c.bf16 %v1061_v6, %v1058_v3 }
 0x112   : > { %v1062_v8 = vpop.f32.mrb[12].mxu0  ;;  %1121 = vmatprep.subr.bf16.mxu1 %v1120_v7 }
 0x113   : > { %v1063_v9 = vpop.f32.mrb[13].mxu0  ;;  %1123 = vmatpush3.bf16.msra.mxu1 %v1120_v7 }
 0x114   : > { %v1064_v10 = vadd.f32 %v1063_v9, %v1062_v8  ;;  %v1065_v11 = vpop.f32.mrb[14].mxu0 }
 0x115   : > { %v1066_v12 = vpop.f32.mrb[15].mxu0 }
 0x116   : > { %v1067_v13 = vadd.f32 %v1066_v12, %v1065_v11 }
 0x118   : > { %v1124_v14 = vpack.c.bf16 %v1067_v13, %v1064_v10 }
 0x11a   : > { %1125 = vmatprep.subr.bf16.mxu1 %v1124_v14 }
 0x11b   : > { %1127 = vmatpush3.bf16.msra.mxu1 %v1124_v14 }
 0x11e   : > { %1101 = vmatmul.mubr.msk.f32.vlgmr.msra.gmra.mrb[0].mxu1 %vm671_vm0, %v1012_v16 }
 0x11f   : > { %1103 = vmatprep.mubr.msk.f32.mxu1 %vm671_vm0, %v1015_v17 }
 0x122   : > { %1104 = vmatmul.mubr.msk.f32.gmra.mrb[2].mxu1 %vm671_vm0, %v1016_v19 }
 0x123   : > { %1106 = vmatprep.mubr.msk.f32.mxu1 %vm671_vm0, %v1019_v20 }
 0x126   : > { %1107 = vmatmul.mubr.msk.f32.gmra.mrb[4].mxu1 %vm671_vm0, %v1020_v22 }
 0x127   : > { %1109 = vmatprep.mubr.msk.f32.mxu1 %vm671_vm0, %v1023_v23 }
 0x12a   : > { %1110 = vmatmul.mubr.msk.f32.gmra.mrb[6].mxu1 %vm671_vm0, %v1024_v24 }
 0x1f1   : > { %v1102_v29 = vpop.f32.mrb[0].mxu1 }
 0x1f2   : > { %v768_v30 = vadd.f32 %v1102_v29, %v639_v28  ;;  %v762_v31 = vpop.f32.mrb[1].mxu1 }
 0x1f3   : > { %v763_v33 = vadd.f32 %v762_v31, %v634_v26 }
 0x1f4   : > { %v802_v34 = vmax.f32 %v768_v30, 0.0 }
 0x1f5   : > { %v801_v36 = vmax.f32 %v763_v33, 0.0  ;;  %v1105_v37 = vpop.f32.mrb[2].mxu1 }
 0x1f6   : > { %v818_v38 = vmul.f32 %v810_v32, %v802_v34  ;;  %v778_v39 = vadd.f32 %v1105_v37, %v649_v27  ;;  %v772_v40 = vpop.f32.mrb[3].mxu1 }
 0x1f7   : > { %v817_v42 = vmul.f32 %v809_v35, %v801_v36  ;;  %v773_v44 = vadd.f32 %v772_v40, %v644_v25 }
 0x1f8   : > { %826 = vst [vmem:[%s1401_s12 + $0x8] sm:$0xff] %v818_v38  ;;  %v804_v46 = vmax.f32 %v778_v39, 0.0 }
 0x1f9   : > { %825 = vst [vmem:[%s1401_s12] sm:$0xff] %v817_v42  ;;  %v803_v48 = vmax.f32 %v773_v44, 0.0  ;;  %v1108_v49 = vpop.f32.mrb[4].mxu1 }
 0x1fa   : > { %v820_v50 = vmul.f32 %v812_v43, %v804_v46  ;;  %v788_v51 = vadd.f32 %v1108_v49, %v659_v41  ;;  %v782_v52 = vpop.f32.mrb[5].mxu1 }
 0x1fb   : > { %v819_v53 = vmul.f32 %v811_v47, %v803_v48  ;;  %v783_v55 = vadd.f32 %v782_v52, %v654_v45 }
 0x1fc   : > { %828 = vst [vmem:[%s1401_s12 + $0x18] sm:$0xff] %v820_v50  ;;  %v806_v56 = vmax.f32 %v788_v51, 0.0 }
 0x1fd   : > { %827 = vst [vmem:[%s1401_s12 + $0x10] sm:$0xff] %v819_v53  ;;  %v805_v59 = vmax.f32 %v783_v55, 0.0  ;;  %v1111_v60 = vpop.f32.mrb[6].mxu1 }
 0x1fe   : > { %v822_v62 = vmul.f32 %v814_v54, %v806_v56  ;;  %v798_v63 = vadd.f32 %v1111_v60, %v669_v58  ;;  %v792_v0 = vpop.f32.mrb[7].mxu1 }
 0x1ff   : > { %v821_v1 = vmul.f32 %v813_v57, %v805_v59  ;;  %v793_v3 = vadd.f32 %v792_v0, %v664_v61 }
 0x200   : > { %830 = vst [vmem:[%s1401_s12 + $0x28] sm:$0xff] %v822_v62  ;;  %v808_v4 = vmax.f32 %v798_v63, 0.0 }
 0x201   : > { %829 = vst [vmem:[%s1401_s12 + $0x20] sm:$0xff] %v821_v1  ;;  %v807_v6 = vmax.f32 %v793_v3, 0.0 }
 0x202   : > { %v824_v7 = vmul.f32 %v816_v2, %v808_v4 }
 0x203   : > { %v823_v8 = vmul.f32 %v815_v5, %v807_v6 }
 0x204   : > { %832 = vst [vmem:[%s1401_s12 + $0x38] sm:$0xff] %v824_v7 }
 0x205   : > { %831 = vst [vmem:[%s1401_s12 + $0x30] sm:$0xff] %v823_v8 }
 0x206 PF: > { %s17_s23 = sadd.s32 1, %s1193_s23   ;;  %s1445_s21 = smov %s1189_s22 }
 0x207   : > { %p14_p5 = scmp.ge.s32.totalorder %s17_s23, 4   ;;  %s1446_s22 = smov %s1448_s24 }
 0x209   :  { %16 = sbr.rel (!%p14_p5) target bundleno = 2 (0x2), region = 93 }

</bundles_post_ra>
